<compile_context>
chip_gen: v6e
topology: v6e:2x2x1
jax: 0.10.0
libtpu: 0.0.40
codegen_flags: <defaults>
</compile_context>

<pallas_src>
import functools

import jax
import jax.numpy as jnp
from jax.experimental import pallas as pl
from jax.experimental.pallas import tpu as pltpu

BN_EPS = 1e-5
LANE = 128

# Heuristics for choosing the resident (no-grid, fully unrolled) fast path.
_RESIDENT_BYTES_BUDGET = 24 * 2**20   # conservative vs v7x 64 MiB physical VMEM
_UNROLL_MAX_BLOCKS = 8                # beyond this, stream per-block via a grid
_VMEM_LIMIT_CAP = 64 * 2**20          # never request above v7x physical VMEM


def _round_up(n, m):
    return ((n + m - 1) // m) * m


# ----------------------------------------------------------------------------
# Resident kernel: no grid, all operands whole in VMEM, static unroll over
# blocks, residual stream kept in vregs.
#  (vreg-pressure ceiling: x/h/r are each ~ceil(B/8)*ceil(dim/128) vregs; past
#   roughly B ~ 128-256 at Dp=128 this spills — use the gridded path / tile B.)
# ----------------------------------------------------------------------------
def _resident_kernel(*refs, nblocks: int, batchnorm: bool, inv_b: float):
    if batchnorm:
        (x_ref, w1_ref, gamma_ref, beta_ref, w2_ref, b2_ref,
         wout_ref, bout_ref, z_ref, rs_ref) = refs
    else:
        (x_ref, w1_ref, b1_ref, w2_ref, b2_ref,
         wout_ref, bout_ref, z_ref, rs_ref) = refs

    x = x_ref[...].astype(jnp.float32)

    for i in range(nblocks):  # static unroll; i is a compile-time constant
        # fc1 (fc1 bias cancels exactly under BN mean-centering -> not added)
        h = jnp.dot(x, w1_ref[i], preferred_element_type=jnp.float32)

        if batchnorm:
            # Two independent cross-sublane reductions (can overlap on XLU).
            s1 = jnp.sum(h, axis=0, keepdims=True)
            s2 = jnp.sum(h * h, axis=0, keepdims=True)
            mean = s1 * inv_b
            var = jnp.maximum(s2 * inv_b - mean * mean, 0.0)  # biased (train-mode)
            h = (h - mean) * jax.lax.rsqrt(var + BN_EPS) * gamma_ref[i] + beta_ref[i]
        else:
            h = h + b1_ref[i]

        h = jnp.maximum(h, 0.0)                               # relu

        # fc2 -> residual branch r   (bf16 operands here are the main lever
        # if D/H are scaled up; keep elementwise math f32, esp. on v5e)
        r = jnp.dot(h, w2_ref[i], preferred_element_type=jnp.float32) + b2_ref[i]
        rs_ref[i] = r.astype(rs_ref.dtype)

        x = r + x                                             # residual add

    # classifier
    z = jnp.dot(x, wout_ref[...], preferred_element_type=jnp.float32) + bout_ref[...]
    z_ref[...] = z.astype(z_ref.dtype)


# ----------------------------------------------------------------------------
# Gridded kernel: grid over nblocks ("arbitrary"), per-block weights streamed
# (double-buffered by BlockSpec), rs written back per block, residual stream
# carried in a VMEM scratch, classifier applied on the last step.
# ----------------------------------------------------------------------------
def _gridded_kernel(*refs, batchnorm: bool, inv_b: float):
    if batchnorm:
        (x_ref, w1_ref, gamma_ref, beta_ref, w2_ref, b2_ref,
         wout_ref, bout_ref, z_ref, rs_ref, xc_ref) = refs
    else:
        (x_ref, w1_ref, b1_ref, w2_ref, b2_ref,
         wout_ref, bout_ref, z_ref, rs_ref, xc_ref) = refs

    i = pl.program_id(0)

    @pl.when(i == 0)
    def _():
        xc_ref[...] = x_ref[...].astype(jnp.float32)

    x = xc_ref[...]

    h = jnp.dot(x, w1_ref[0], preferred_element_type=jnp.float32)
    if batchnorm:
        s1 = jnp.sum(h, axis=0, keepdims=True)
        s2 = jnp.sum(h * h, axis=0, keepdims=True)
        mean = s1 * inv_b
        var = jnp.maximum(s2 * inv_b - mean * mean, 0.0)
        h = (h - mean) * jax.lax.rsqrt(var + BN_EPS) * gamma_ref[0] + beta_ref[0]
    else:
        h = h + b1_ref[0]
    h = jnp.maximum(h, 0.0)

    r = jnp.dot(h, w2_ref[0], preferred_element_type=jnp.float32) + b2_ref[0]
    rs_ref[0] = r.astype(rs_ref.dtype)

    x = r + x
    xc_ref[...] = x

    @pl.when(i == pl.num_programs(0) - 1)
    def _():
        z = jnp.dot(x, wout_ref[...], preferred_element_type=jnp.float32) + bout_ref[...]
        z_ref[...] = z.astype(z_ref.dtype)


# ----------------------------------------------------------------------------
# Wrapper
# ----------------------------------------------------------------------------
def prepare_params(params, *, batchnorm: bool):
    """Pad/reshape all parameters to lane width ONCE (hoisted out of forward).

    Zero padding is exact: padded weight rows/cols, biases, gamma and beta are
    zero, so padded lanes stay identically zero through BN/ReLU/residual.
    """
    w1, b1 = params["w1"], params["b1"]
    gamma, beta = params["gamma"], params["beta"]
    w2, b2 = params["w2"], params["b2"]
    wout, bout = params["wout"], params["bout"]
    nblocks, D, H = w1.shape
    C = wout.shape[1]
    Dp, Hp, Cp = _round_up(D, LANE), _round_up(H, LANE), _round_up(C, LANE)

    padded = {
        "w1": jnp.pad(w1, ((0, 0), (0, Dp - D), (0, Hp - H))),
        "w2": jnp.pad(w2, ((0, 0), (0, Hp - H), (0, Dp - D))),
        "b2": jnp.pad(b2, ((0, 0), (0, Dp - D))).reshape(nblocks, 1, Dp),
        "wout": jnp.pad(wout, ((0, Dp - D), (0, Cp - C))),
        "bout": jnp.pad(bout, ((0, Cp - C),)).reshape(1, Cp),
    }
    if batchnorm:
        # fc1 bias cancels exactly under BN -> not padded, not passed, not DMA'd.
        padded["gamma"] = jnp.pad(gamma, ((0, 0), (0, Hp - H))).reshape(nblocks, 1, Hp)
        padded["beta"] = jnp.pad(beta, ((0, 0), (0, Hp - H))).reshape(nblocks, 1, Hp)
    else:
        padded["b1"] = jnp.pad(b1, ((0, 0), (0, Hp - H))).reshape(nblocks, 1, Hp)

    meta = dict(nblocks=nblocks, D=D, H=H, C=C, Dp=Dp, Hp=Hp, Cp=Cp,
                batchnorm=batchnorm)
    return padded, meta


def one_rep_resnet_forward(x, padded, meta, *, force_grid: bool = False):
    """Returns (z, rs) with z: (B, nclasses), rs: (nblocks, B, inputdim)."""
    nblocks, D, C = meta["nblocks"], meta["D"], meta["C"]
    Dp, Hp, Cp = meta["Dp"], meta["Hp"], meta["Cp"]
    batchnorm = meta["batchnorm"]
    B = x.shape[0]
    inv_b = 1.0 / B

    # Only the activations are padded per call (param padding is hoisted).
    xp = jnp.pad(x, ((0, 0), (0, Dp - D)))

    if batchnorm:
        param_args = (padded["w1"], padded["gamma"], padded["beta"],
                      padded["w2"], padded["b2"], padded["wout"], padded["bout"])
    else:
        param_args = (padded["w1"], padded["b1"],
                      padded["w2"], padded["b2"], padded["wout"], padded["bout"])

    out_shape = (jax.ShapeDtypeStruct((B, Cp), jnp.float32),
                 jax.ShapeDtypeStruct((nblocks, B, Dp), jnp.float32))

    in_bytes = sum(int(a.size) * a.dtype.itemsize for a in (xp,) + param_args)
    out_bytes = (B * Cp + nblocks * B * Dp) * 4
    resident_bytes = in_bytes + out_bytes
    vmem_limit = int(min(_VMEM_LIMIT_CAP,
                         max(16 * 2**20, 2 * resident_bytes + 2 * 2**20)))

    use_grid = (force_grid
                or nblocks > _UNROLL_MAX_BLOCKS
                or resident_bytes > _RESIDENT_BYTES_BUDGET)

    if not use_grid:
        # Single invocation, no grid: all operands resident in VMEM, both
        # outputs written once, lane-dense.
        kernel = functools.partial(_resident_kernel, nblocks=nblocks,
                                   batchnorm=batchnorm, inv_b=inv_b)
        vmem_spec = pl.BlockSpec(memory_space=pltpu.MemorySpace.VMEM)
        z_pad, rs_pad = pl.pallas_call(
            kernel,
            out_shape=out_shape,
            in_specs=[vmem_spec] * (1 + len(param_args)),
            out_specs=(vmem_spec, vmem_spec),
            compiler_params=pltpu.CompilerParams(vmem_limit_bytes=vmem_limit),
        )(xp, *param_args)
    else:
        # Grid over nblocks ("arbitrary"): per-block weight streaming and
        # blocked rs writeback, residual stream carried in VMEM scratch.
        kernel = functools.partial(_gridded_kernel,
                                   batchnorm=batchnorm, inv_b=inv_b)
        in_specs = [pl.BlockSpec((B, Dp), lambda i: (0, 0)),               # x
                    pl.BlockSpec((1, Dp, Hp), lambda i: (i, 0, 0))]        # w1
        if batchnorm:
            in_specs += [pl.BlockSpec((1, 1, Hp), lambda i: (i, 0, 0)),    # gamma
                         pl.BlockSpec((1, 1, Hp), lambda i: (i, 0, 0))]    # beta
        else:
            in_specs += [pl.BlockSpec((1, 1, Hp), lambda i: (i, 0, 0))]    # b1
        in_specs += [pl.BlockSpec((1, Hp, Dp), lambda i: (i, 0, 0)),       # w2
                     pl.BlockSpec((1, 1, Dp), lambda i: (i, 0, 0)),        # b2
                     pl.BlockSpec((Dp, Cp), lambda i: (0, 0)),             # wout
                     pl.BlockSpec((1, Cp), lambda i: (0, 0))]              # bout

        grid_spec = pltpu.PrefetchScalarGridSpec(
            num_scalar_prefetch=0,
            grid=(nblocks,),
            in_specs=in_specs,
            out_specs=[pl.BlockSpec((B, Cp), lambda i: (0, 0)),            # z (resident)
                       pl.BlockSpec((1, B, Dp), lambda i: (i, 0, 0))],     # rs (per-block)
            scratch_shapes=[pltpu.VMEM((B, Dp), jnp.float32)],             # x carry
        )
        z_pad, rs_pad = pl.pallas_call(
            kernel,
            out_shape=out_shape,
            grid_spec=grid_spec,
            compiler_params=pltpu.CompilerParams(
                dimension_semantics=("arbitrary",),
                vmem_limit_bytes=vmem_limit),
        )(xp, *param_args)

    # Downstream consumers that tolerate padded shapes can skip these slices.
    return z_pad[:, :C], rs_pad[:, :, :D]


# ----------------------------------------------------------------------------
# Parameter init (stands in for `initialize`) and pure-JAX reference
# ----------------------------------------------------------------------------
def init_params(key, nblocks, inputdim, hiddendim, nclasses,
                learnclassifier, yintercept):
    keys = jax.random.split(key, 6)
    w1 = 0.5 * jax.random.normal(keys[0], (nblocks, inputdim, hiddendim), jnp.float32)
    b1 = 0.1 * jax.random.normal(keys[1], (nblocks, hiddendim), jnp.float32)
    w2 = 0.5 * jax.random.normal(keys[2], (nblocks, hiddendim, inputdim), jnp.float32)
    b2 = 0.1 * jax.random.normal(keys[3], (nblocks, inputdim), jnp.float32)
    gamma = jnp.ones((nblocks, hiddendim), jnp.float32)   # BN weight init
    beta = jnp.zeros((nblocks, hiddendim), jnp.float32)   # BN bias init

    if learnclassifier == 1:
        wout = 0.5 * jax.random.normal(keys[4], (inputdim, nclasses), jnp.float32)
        bout = 0.1 * jax.random.normal(keys[5], (nclasses,), jnp.float32)
    else:
        # PyTorch: weight = [[1,1],[0,0]] with Linear computing x @ W.T + b,
        # so in (in, out) layout wout = W.T.
        assert inputdim == 2 and nclasses == 2, "fixed classifier implies 2x2"
        wout = jnp.array([[1.0, 1.0], [0.0, 0.0]], jnp.float32).T
        bout = jnp.array([yintercept, 0.0], jnp.float32)

    return dict(w1=w1, b1=b1, gamma=gamma, beta=beta, w2=w2, b2=b2,
                wout=wout, bout=bout)


def reference_forward(x, params, *, batchnorm: bool):
    """Pure-JAX reference mirroring the PyTorch forward (train-mode BN)."""
    w1, b1, gamma, beta = params["w1"], params["b1"], params["gamma"], params["beta"]
    w2, b2, wout, bout = params["w2"], params["b2"], params["wout"], params["bout"]
    rs = []
    for i in range(w1.shape[0]):
        h = x @ w1[i] + b1[i]
        if batchnorm:
            mean = jnp.mean(h, axis=0, keepdims=True)
            var = jnp.mean((h - mean) ** 2, axis=0, keepdims=True)
            h = (h - mean) / jnp.sqrt(var + BN_EPS) * gamma[i] + beta[i]
        h = jnp.maximum(h, 0.0)
        r = h @ w2[i] + b2[i]
        x = r + x
        rs.append(r)
    z = x @ wout + bout
    return z, jnp.stack(rs, axis=0)


if __name__ == "__main__":
    # Small shapes consistent with the module's fixed-classifier branch
    # (learnclassifier=0 implies inputdim == nclasses == 2).
    nblocks, inputdim, hiddendim, nclasses = 3, 2, 32, 2
    batch = 8                      # keep B a multiple of 8 for unmasked stores
    learnclassifier = 0
    yintercept = 0.5

    key = jax.random.PRNGKey(0)
    kx, kp = jax.random.split(key)
    x = jax.random.normal(kx, (batch, inputdim), jnp.float32)
    params = init_params(kp, nblocks, inputdim, hiddendim, nclasses,
                         learnclassifier, yintercept)

    z = rs = None
    for batchnorm in (True, False):
        padded, meta = prepare_params(params, batchnorm=batchnorm)  # hoisted padding
        z_ref, rs_ref = reference_forward(x, params, batchnorm=batchnorm)
        for force_grid in (False, True):
            fwd = jax.jit(functools.partial(one_rep_resnet_forward,
                                            meta=meta, force_grid=force_grid))
            z, rs = fwd(x, padded)
            jax.block_until_ready((z, rs))
            assert jnp.allclose(z, z_ref, atol=1e-4, rtol=1e-4), (batchnorm, force_grid)
            assert jnp.allclose(rs, rs_ref, atol=1e-4, rtol=1e-4), (batchnorm, force_grid)

    # rs as a list of per-block tensors, matching the PyTorch return type.
    rs_list = [rs[i] for i in range(nblocks)]
    del rs_list

    print("KERNEL_OK")
</pallas_src>

<mosaic_0001>
module attributes {stable_mosaic.version = 11 : i64} {
  func.func @_resident_kernel(%arg0: memref<8x128xf32, #tpu.memory_space<vmem>>, %arg1: memref<3x128x128xf32, #tpu.memory_space<vmem>>, %arg2: memref<3x1x128xf32, #tpu.memory_space<vmem>>, %arg3: memref<3x1x128xf32, #tpu.memory_space<vmem>>, %arg4: memref<3x128x128xf32, #tpu.memory_space<vmem>>, %arg5: memref<3x1x128xf32, #tpu.memory_space<vmem>>, %arg6: memref<128x128xf32, #tpu.memory_space<vmem>>, %arg7: memref<1x128xf32, #tpu.memory_space<vmem>>, %arg8: memref<8x128xf32, #tpu.memory_space<vmem>>, %arg9: memref<3x8x128xf32, #tpu.memory_space<vmem>>) attributes {dimension_semantics = [], scalar_prefetch = 0 : i64, scratch_operands = 0 : i64, tpu.core_type = #tpu.core_type<tc>} {
    %c0 = arith.constant 0 : index
    %c0_0 = arith.constant 0 : index
    %0 = vector.load %arg0[%c0, %c0_0] : memref<8x128xf32, #tpu.memory_space<vmem>>, vector<8x128xf32>
    %c0_1 = arith.constant 0 : index
    %c0_2 = arith.constant 0 : index
    %c0_3 = arith.constant 0 : index
    %1 = vector.load %arg1[%c0_1, %c0_2, %c0_3] : memref<3x128x128xf32, #tpu.memory_space<vmem>>, vector<1x128x128xf32>
    %2 = vector.shape_cast %1 : vector<1x128x128xf32> to vector<128x128xf32>
    %cst = arith.constant dense<0.000000e+00> : vector<8x128xf32>
    %3 = tpu.matmul %0, %2, %cst {dimension_numbers = #tpu.dot_dimension_numbers<[1], [0], [0], [1], [0, 0, 1, 1], [], []>} : vector<8x128xf32>, vector<128x128xf32>, vector<8x128xf32> -> vector<8x128xf32>
    %cst_4 = arith.constant dense<0.000000e+00> : vector<128xf32>
    %4 = vector.multi_reduction <add>, %3, %cst_4 [0] : vector<8x128xf32> to vector<128xf32>
    %5 = vector.shape_cast %4 : vector<128xf32> to vector<1x128xf32>
    %6 = arith.mulf %3, %3 : vector<8x128xf32>
    %cst_5 = arith.constant dense<0.000000e+00> : vector<128xf32>
    %7 = vector.multi_reduction <add>, %6, %cst_5 [0] : vector<8x128xf32> to vector<128xf32>
    %8 = vector.shape_cast %7 : vector<128xf32> to vector<1x128xf32>
    %cst_6 = arith.constant 1.250000e-01 : f32
    %9 = vector.broadcast %cst_6 : f32 to vector<1x128xf32>
    %10 = arith.mulf %5, %9 : vector<1x128xf32>
    %cst_7 = arith.constant 1.250000e-01 : f32
    %11 = vector.broadcast %cst_7 : f32 to vector<1x128xf32>
    %12 = arith.mulf %8, %11 : vector<1x128xf32>
    %13 = arith.mulf %10, %10 : vector<1x128xf32>
    %14 = arith.subf %12, %13 : vector<1x128xf32>
    %cst_8 = arith.constant 0.000000e+00 : f32
    %15 = vector.broadcast %cst_8 : f32 to vector<1x128xf32>
    %16 = arith.maximumf %14, %15 : vector<1x128xf32>
    %17 = vector.broadcast %10 : vector<1x128xf32> to vector<8x128xf32>
    %18 = arith.subf %3, %17 : vector<8x128xf32>
    %cst_9 = arith.constant 9.99999974E-6 : f32
    %19 = vector.broadcast %cst_9 : f32 to vector<1x128xf32>
    %20 = arith.addf %16, %19 : vector<1x128xf32>
    %21 = math.rsqrt %20 : vector<1x128xf32>
    %22 = vector.broadcast %21 : vector<1x128xf32> to vector<8x128xf32>
    %23 = arith.mulf %18, %22 : vector<8x128xf32>
    %c0_10 = arith.constant 0 : index
    %c0_11 = arith.constant 0 : index
    %c0_12 = arith.constant 0 : index
    %24 = vector.load %arg2[%c0_10, %c0_11, %c0_12] : memref<3x1x128xf32, #tpu.memory_space<vmem>>, vector<1x1x128xf32>
    %25 = vector.shape_cast %24 : vector<1x1x128xf32> to vector<1x128xf32>
    %26 = vector.broadcast %25 : vector<1x128xf32> to vector<8x128xf32>
    %27 = arith.mulf %23, %26 : vector<8x128xf32>
    %c0_13 = arith.constant 0 : index
    %c0_14 = arith.constant 0 : index
    %c0_15 = arith.constant 0 : index
    %28 = vector.load %arg3[%c0_13, %c0_14, %c0_15] : memref<3x1x128xf32, #tpu.memory_space<vmem>>, vector<1x1x128xf32>
    %29 = vector.shape_cast %28 : vector<1x1x128xf32> to vector<1x128xf32>
    %30 = vector.broadcast %29 : vector<1x128xf32> to vector<8x128xf32>
    %31 = arith.addf %27, %30 : vector<8x128xf32>
    %cst_16 = arith.constant 0.000000e+00 : f32
    %32 = vector.broadcast %cst_16 : f32 to vector<8x128xf32>
    %33 = arith.maximumf %31, %32 : vector<8x128xf32>
    %c0_17 = arith.constant 0 : index
    %c0_18 = arith.constant 0 : index
    %c0_19 = arith.constant 0 : index
    %34 = vector.load %arg4[%c0_17, %c0_18, %c0_19] : memref<3x128x128xf32, #tpu.memory_space<vmem>>, vector<1x128x128xf32>
    %35 = vector.shape_cast %34 : vector<1x128x128xf32> to vector<128x128xf32>
    %cst_20 = arith.constant dense<0.000000e+00> : vector<8x128xf32>
    %36 = tpu.matmul %33, %35, %cst_20 {dimension_numbers = #tpu.dot_dimension_numbers<[1], [0], [0], [1], [0, 0, 1, 1], [], []>} : vector<8x128xf32>, vector<128x128xf32>, vector<8x128xf32> -> vector<8x128xf32>
    %c0_21 = arith.constant 0 : index
    %c0_22 = arith.constant 0 : index
    %c0_23 = arith.constant 0 : index
    %37 = vector.load %arg5[%c0_21, %c0_22, %c0_23] : memref<3x1x128xf32, #tpu.memory_space<vmem>>, vector<1x1x128xf32>
    %38 = vector.shape_cast %37 : vector<1x1x128xf32> to vector<1x128xf32>
    %39 = vector.broadcast %38 : vector<1x128xf32> to vector<8x128xf32>
    %40 = arith.addf %36, %39 : vector<8x128xf32>
    %c0_24 = arith.constant 0 : index
    %c0_25 = arith.constant 0 : index
    %c0_26 = arith.constant 0 : index
    %41 = vector.load %arg9[%c0_24, %c0_25, %c0_26] : memref<3x8x128xf32, #tpu.memory_space<vmem>>, vector<1x8x128xf32>
    %42 = vector.shape_cast %41 : vector<1x8x128xf32> to vector<8x128xf32>
    %43 = vector.shape_cast %40 : vector<8x128xf32> to vector<1x8x128xf32>
    tpu.vector_store %arg9[%c0_24, %c0_25, %c0_26], %43 {strides = array<i32>} : memref<3x8x128xf32, #tpu.memory_space<vmem>>, vector<1x8x128xf32>,
    %44 = arith.addf %40, %0 : vector<8x128xf32>
    %c1 = arith.constant 1 : index
    %c0_27 = arith.constant 0 : index
    %c0_28 = arith.constant 0 : index
    %45 = vector.load %arg1[%c1, %c0_27, %c0_28] : memref<3x128x128xf32, #tpu.memory_space<vmem>>, vector<1x128x128xf32>
    %46 = vector.shape_cast %45 : vector<1x128x128xf32> to vector<128x128xf32>
    %cst_29 = arith.constant dense<0.000000e+00> : vector<8x128xf32>
    %47 = tpu.matmul %44, %46, %cst_29 {dimension_numbers = #tpu.dot_dimension_numbers<[1], [0], [0], [1], [0, 0, 1, 1], [], []>} : vector<8x128xf32>, vector<128x128xf32>, vector<8x128xf32> -> vector<8x128xf32>
    %cst_30 = arith.constant dense<0.000000e+00> : vector<128xf32>
    %48 = vector.multi_reduction <add>, %47, %cst_30 [0] : vector<8x128xf32> to vector<128xf32>
    %49 = vector.shape_cast %48 : vector<128xf32> to vector<1x128xf32>
    %50 = arith.mulf %47, %47 : vector<8x128xf32>
    %cst_31 = arith.constant dense<0.000000e+00> : vector<128xf32>
    %51 = vector.multi_reduction <add>, %50, %cst_31 [0] : vector<8x128xf32> to vector<128xf32>
    %52 = vector.shape_cast %51 : vector<128xf32> to vector<1x128xf32>
    %cst_32 = arith.constant 1.250000e-01 : f32
    %53 = vector.broadcast %cst_32 : f32 to vector<1x128xf32>
    %54 = arith.mulf %49, %53 : vector<1x128xf32>
    %cst_33 = arith.constant 1.250000e-01 : f32
    %55 = vector.broadcast %cst_33 : f32 to vector<1x128xf32>
    %56 = arith.mulf %52, %55 : vector<1x128xf32>
    %57 = arith.mulf %54, %54 : vector<1x128xf32>
    %58 = arith.subf %56, %57 : vector<1x128xf32>
    %cst_34 = arith.constant 0.000000e+00 : f32
    %59 = vector.broadcast %cst_34 : f32 to vector<1x128xf32>
    %60 = arith.maximumf %58, %59 : vector<1x128xf32>
    %61 = vector.broadcast %54 : vector<1x128xf32> to vector<8x128xf32>
    %62 = arith.subf %47, %61 : vector<8x128xf32>
    %cst_35 = arith.constant 9.99999974E-6 : f32
    %63 = vector.broadcast %cst_35 : f32 to vector<1x128xf32>
    %64 = arith.addf %60, %63 : vector<1x128xf32>
    %65 = math.rsqrt %64 : vector<1x128xf32>
    %66 = vector.broadcast %65 : vector<1x128xf32> to vector<8x128xf32>
    %67 = arith.mulf %62, %66 : vector<8x128xf32>
    %c1_36 = arith.constant 1 : index
    %c0_37 = arith.constant 0 : index
    %c0_38 = arith.constant 0 : index
    %68 = vector.load %arg2[%c1_36, %c0_37, %c0_38] : memref<3x1x128xf32, #tpu.memory_space<vmem>>, vector<1x1x128xf32>
    %69 = vector.shape_cast %68 : vector<1x1x128xf32> to vector<1x128xf32>
    %70 = vector.broadcast %69 : vector<1x128xf32> to vector<8x128xf32>
    %71 = arith.mulf %67, %70 : vector<8x128xf32>
    %c1_39 = arith.constant 1 : index
    %c0_40 = arith.constant 0 : index
    %c0_41 = arith.constant 0 : index
    %72 = vector.load %arg3[%c1_39, %c0_40, %c0_41] : memref<3x1x128xf32, #tpu.memory_space<vmem>>, vector<1x1x128xf32>
    %73 = vector.shape_cast %72 : vector<1x1x128xf32> to vector<1x128xf32>
    %74 = vector.broadcast %73 : vector<1x128xf32> to vector<8x128xf32>
    %75 = arith.addf %71, %74 : vector<8x128xf32>
    %cst_42 = arith.constant 0.000000e+00 : f32
    %76 = vector.broadcast %cst_42 : f32 to vector<8x128xf32>
    %77 = arith.maximumf %75, %76 : vector<8x128xf32>
    %c1_43 = arith.constant 1 : index
    %c0_44 = arith.constant 0 : index
    %c0_45 = arith.constant 0 : index
    %78 = vector.load %arg4[%c1_43, %c0_44, %c0_45] : memref<3x128x128xf32, #tpu.memory_space<vmem>>, vector<1x128x128xf32>
    %79 = vector.shape_cast %78 : vector<1x128x128xf32> to vector<128x128xf32>
    %cst_46 = arith.constant dense<0.000000e+00> : vector<8x128xf32>
    %80 = tpu.matmul %77, %79, %cst_46 {dimension_numbers = #tpu.dot_dimension_numbers<[1], [0], [0], [1], [0, 0, 1, 1], [], []>} : vector<8x128xf32>, vector<128x128xf32>, vector<8x128xf32> -> vector<8x128xf32>
    %c1_47 = arith.constant 1 : index
    %c0_48 = arith.constant 0 : index
    %c0_49 = arith.constant 0 : index
    %81 = vector.load %arg5[%c1_47, %c0_48, %c0_49] : memref<3x1x128xf32, #tpu.memory_space<vmem>>, vector<1x1x128xf32>
    %82 = vector.shape_cast %81 : vector<1x1x128xf32> to vector<1x128xf32>
    %83 = vector.broadcast %82 : vector<1x128xf32> to vector<8x128xf32>
    %84 = arith.addf %80, %83 : vector<8x128xf32>
    %c1_50 = arith.constant 1 : index
    %c0_51 = arith.constant 0 : index
    %c0_52 = arith.constant 0 : index
    %85 = vector.load %arg9[%c1_50, %c0_51, %c0_52] : memref<3x8x128xf32, #tpu.memory_space<vmem>>, vector<1x8x128xf32>
    %86 = vector.shape_cast %85 : vector<1x8x128xf32> to vector<8x128xf32>
    %87 = vector.shape_cast %84 : vector<8x128xf32> to vector<1x8x128xf32>
    tpu.vector_store %arg9[%c1_50, %c0_51, %c0_52], %87 {strides = array<i32>} : memref<3x8x128xf32, #tpu.memory_space<vmem>>, vector<1x8x128xf32>,
    %88 = arith.addf %84, %44 : vector<8x128xf32>
    %c2 = arith.constant 2 : index
    %c0_53 = arith.constant 0 : index
    %c0_54 = arith.constant 0 : index
    %89 = vector.load %arg1[%c2, %c0_53, %c0_54] : memref<3x128x128xf32, #tpu.memory_space<vmem>>, vector<1x128x128xf32>
    %90 = vector.shape_cast %89 : vector<1x128x128xf32> to vector<128x128xf32>
    %cst_55 = arith.constant dense<0.000000e+00> : vector<8x128xf32>
    %91 = tpu.matmul %88, %90, %cst_55 {dimension_numbers = #tpu.dot_dimension_numbers<[1], [0], [0], [1], [0, 0, 1, 1], [], []>} : vector<8x128xf32>, vector<128x128xf32>, vector<8x128xf32> -> vector<8x128xf32>
    %cst_56 = arith.constant dense<0.000000e+00> : vector<128xf32>
    %92 = vector.multi_reduction <add>, %91, %cst_56 [0] : vector<8x128xf32> to vector<128xf32>
    %93 = vector.shape_cast %92 : vector<128xf32> to vector<1x128xf32>
    %94 = arith.mulf %91, %91 : vector<8x128xf32>
    %cst_57 = arith.constant dense<0.000000e+00> : vector<128xf32>
    %95 = vector.multi_reduction <add>, %94, %cst_57 [0] : vector<8x128xf32> to vector<128xf32>
    %96 = vector.shape_cast %95 : vector<128xf32> to vector<1x128xf32>
    %cst_58 = arith.constant 1.250000e-01 : f32
    %97 = vector.broadcast %cst_58 : f32 to vector<1x128xf32>
    %98 = arith.mulf %93, %97 : vector<1x128xf32>
    %cst_59 = arith.constant 1.250000e-01 : f32
    %99 = vector.broadcast %cst_59 : f32 to vector<1x128xf32>
    %100 = arith.mulf %96, %99 : vector<1x128xf32>
    %101 = arith.mulf %98, %98 : vector<1x128xf32>
    %102 = arith.subf %100, %101 : vector<1x128xf32>
    %cst_60 = arith.constant 0.000000e+00 : f32
    %103 = vector.broadcast %cst_60 : f32 to vector<1x128xf32>
    %104 = arith.maximumf %102, %103 : vector<1x128xf32>
    %105 = vector.broadcast %98 : vector<1x128xf32> to vector<8x128xf32>
    %106 = arith.subf %91, %105 : vector<8x128xf32>
    %cst_61 = arith.constant 9.99999974E-6 : f32
    %107 = vector.broadcast %cst_61 : f32 to vector<1x128xf32>
    %108 = arith.addf %104, %107 : vector<1x128xf32>
    %109 = math.rsqrt %108 : vector<1x128xf32>
    %110 = vector.broadcast %109 : vector<1x128xf32> to vector<8x128xf32>
    %111 = arith.mulf %106, %110 : vector<8x128xf32>
    %c2_62 = arith.constant 2 : index
    %c0_63 = arith.constant 0 : index
    %c0_64 = arith.constant 0 : index
    %112 = vector.load %arg2[%c2_62, %c0_63, %c0_64] : memref<3x1x128xf32, #tpu.memory_space<vmem>>, vector<1x1x128xf32>
    %113 = vector.shape_cast %112 : vector<1x1x128xf32> to vector<1x128xf32>
    %114 = vector.broadcast %113 : vector<1x128xf32> to vector<8x128xf32>
    %115 = arith.mulf %111, %114 : vector<8x128xf32>
    %c2_65 = arith.constant 2 : index
    %c0_66 = arith.constant 0 : index
    %c0_67 = arith.constant 0 : index
    %116 = vector.load %arg3[%c2_65, %c0_66, %c0_67] : memref<3x1x128xf32, #tpu.memory_space<vmem>>, vector<1x1x128xf32>
    %117 = vector.shape_cast %116 : vector<1x1x128xf32> to vector<1x128xf32>
    %118 = vector.broadcast %117 : vector<1x128xf32> to vector<8x128xf32>
    %119 = arith.addf %115, %118 : vector<8x128xf32>
    %cst_68 = arith.constant 0.000000e+00 : f32
    %120 = vector.broadcast %cst_68 : f32 to vector<8x128xf32>
    %121 = arith.maximumf %119, %120 : vector<8x128xf32>
    %c2_69 = arith.constant 2 : index
    %c0_70 = arith.constant 0 : index
    %c0_71 = arith.constant 0 : index
    %122 = vector.load %arg4[%c2_69, %c0_70, %c0_71] : memref<3x128x128xf32, #tpu.memory_space<vmem>>, vector<1x128x128xf32>
    %123 = vector.shape_cast %122 : vector<1x128x128xf32> to vector<128x128xf32>
    %cst_72 = arith.constant dense<0.000000e+00> : vector<8x128xf32>
    %124 = tpu.matmul %121, %123, %cst_72 {dimension_numbers = #tpu.dot_dimension_numbers<[1], [0], [0], [1], [0, 0, 1, 1], [], []>} : vector<8x128xf32>, vector<128x128xf32>, vector<8x128xf32> -> vector<8x128xf32>
    %c2_73 = arith.constant 2 : index
    %c0_74 = arith.constant 0 : index
    %c0_75 = arith.constant 0 : index
    %125 = vector.load %arg5[%c2_73, %c0_74, %c0_75] : memref<3x1x128xf32, #tpu.memory_space<vmem>>, vector<1x1x128xf32>
    %126 = vector.shape_cast %125 : vector<1x1x128xf32> to vector<1x128xf32>
    %127 = vector.broadcast %126 : vector<1x128xf32> to vector<8x128xf32>
    %128 = arith.addf %124, %127 : vector<8x128xf32>
    %c2_76 = arith.constant 2 : index
    %c0_77 = arith.constant 0 : index
    %c0_78 = arith.constant 0 : index
    %129 = vector.load %arg9[%c2_76, %c0_77, %c0_78] : memref<3x8x128xf32, #tpu.memory_space<vmem>>, vector<1x8x128xf32>
    %130 = vector.shape_cast %129 : vector<1x8x128xf32> to vector<8x128xf32>
    %131 = vector.shape_cast %128 : vector<8x128xf32> to vector<1x8x128xf32>
    tpu.vector_store %arg9[%c2_76, %c0_77, %c0_78], %131 {strides = array<i32>} : memref<3x8x128xf32, #tpu.memory_space<vmem>>, vector<1x8x128xf32>,
    %132 = arith.addf %128, %88 : vector<8x128xf32>
    %c0_79 = arith.constant 0 : index
    %c0_80 = arith.constant 0 : index
    %133 = vector.load %arg6[%c0_79, %c0_80] : memref<128x128xf32, #tpu.memory_space<vmem>>, vector<128x128xf32>
    %cst_81 = arith.constant dense<0.000000e+00> : vector<8x128xf32>
    %134 = tpu.matmul %132, %133, %cst_81 {dimension_numbers = #tpu.dot_dimension_numbers<[1], [0], [0], [1], [0, 0, 1, 1], [], []>} : vector<8x128xf32>, vector<128x128xf32>, vector<8x128xf32> -> vector<8x128xf32>
    %c0_82 = arith.constant 0 : index
    %c0_83 = arith.constant 0 : index
    %135 = vector.load %arg7[%c0_82, %c0_83] : memref<1x128xf32, #tpu.memory_space<vmem>>, vector<1x128xf32>
    %136 = vector.broadcast %135 : vector<1x128xf32> to vector<8x128xf32>
    %137 = arith.addf %134, %136 : vector<8x128xf32>
    %c0_84 = arith.constant 0 : index
    %c0_85 = arith.constant 0 : index
    %138 = vector.load %arg8[%c0_84, %c0_85] : memref<8x128xf32, #tpu.memory_space<vmem>>, vector<8x128xf32>
    tpu.vector_store %arg8[%c0_84, %c0_85], %137 {strides = array<i32>} : memref<8x128xf32, #tpu.memory_space<vmem>>, vector<8x128xf32>,
    return
  }
}

</mosaic_0001>

<bundles_post_ra>
// kernel: one_rep_resnet_forward.1
= control target key start
LH: loop header
LB: loop body
LE: loop exit
PB: predicated region body
PF: predicated region fallthrough
CT: control target
= control target key end

     0   :  { %15 = vsyncpa [#allocation3], 0  ;;  %s1557_s0 = inlined_call_operand.vmem [shape: f32[8,128], index: 0, kind: input, shape index: {}]   ;;  %s1558_s1 = inlined_call_operand.hbm [shape: f32[3,128,128], index: 1, kind: input, shape index: {}]   ;;  %s1559_s2 = inlined_call_operand.vmem [shape: f32[3,1,128], index: 2, kind: input, shape index: {}]   ;;  %s1560_s3 = inlined_call_operand.vmem [shape: f32[3,1,128], index: 3, kind: input, shape index: {}]   ;;  %s1561_s4 = inlined_call_operand.hbm [shape: f32[3,128,128], index: 4, kind: input, shape index: {}]   ;;  %s1562_s5 = inlined_call_operand.vmem [shape: f32[3,1,128], index: 5, kind: input, shape index: {}]   ;;  %s1563_s6 = inlined_call_operand.hbm [shape: f32[128,128], index: 6, kind: input, shape index: {}]   ;;  %s1564_s7 = inlined_call_operand.vmem [shape: f32[1,128], index: 7, kind: input, shape index: {}]   ;;  %s1565_s8 = inlined_call_operand.vmem [shape: f32[8,128], index: 8, kind: output, shape index: {0}]   ;;  %s1566_s9 = inlined_call_operand.vmem [shape: f32[3,8,128], index: 9, kind: output, shape index: {1}]  }
   0x1   :  { %16 = vsyncpa [#allocation5], 0  ;;  %s1308_s30 = smov [#allocation4]   ;;  %s1309_s11 = smov [#allocation2]  }
   0x2   :  { %s40_s10 = sshll.u32 %s1308_s30, 4  ;;  %s24_s12 = sshll.u32 %s1309_s11, 4  ;;  %s41_s10 = int_to_ptr.vmem [resolvable:$true] %s40_s10  ;;  %s25_s12 = int_to_ptr.vmem [resolvable:$true] %s24_s12 }
   0x3   :  { %s1252_s13 = scalar_lea.vmem %s41_s10, 6144  ;;  %p1257_p1 = scmp.lt.s32.totalorder %s41_s10, %s41_s10 }
   0x4   :  { %p1253_p0 = scmp.ne.s32.totalorder %s41_s10, %s1252_s13  ;;  %p1258_p2 = scmp.lt.s32.totalorder %s1252_s13, %s1252_s13 }
   0x6   :  { %p1259_p3 = por %p1258_p2, %p1257_p1 }
   0x8   :  { %p1260_p4 = pnand %p1259_p3, %p1253_p0 }
   0xa   :  { %1263 = shalt.err (!%p1260_p4)
}
   0xb   :  { %s1310_s14 = smov 128   ;;  %s1311_s15 = smov 8  }
   0xc   :  { %46 = dma.hbm_to_vmem [thread:$0]  %s1561_s4, 6144, %s41_s10, [#allocation5], %s1310_s14, %s1310_s14, %s1311_s15  }
   0xd   :  { %s1272_s18 = scalar_lea.vmem %s25_s12, 6144  ;;  %p1277_p6 = scmp.lt.s32.totalorder %s25_s12, %s25_s12 }
   0xe   :  { %p1273_p5 = scmp.ne.s32.totalorder %s25_s12, %s1272_s18  ;;  %p1278_p7 = scmp.lt.s32.totalorder %s1272_s18, %s1272_s18 }
  0x10   :  { %p1279_p8 = por %p1278_p7, %p1277_p6 }
  0x12   :  { %p1280_p9 = pnand %p1279_p8, %p1273_p5 }
  0x14   :  { %1283 = shalt.err (!%p1280_p9)
}
  0x15   :  { %30 = dma.hbm_to_vmem [thread:$0]  %s1558_s1, 6144, %s25_s12, [#allocation3], %s1310_s14, %s1310_s14, %s1311_s15  }
  0x16   :  { %s1312_s21 = smov [#allocation6]  }
  0x17   :  { %s54_s22 = sshll.u32 %s1312_s21, 4  ;;  %s55_s22 = int_to_ptr.vmem [resolvable:$true] %s54_s22 }
  0x18   :  { %s1292_s23 = scalar_lea.vmem %s55_s22, 2048  ;;  %p1297_p11 = scmp.lt.s32.totalorder %s55_s22, %s55_s22 }
  0x19   :  { %p1293_p10 = scmp.ne.s32.totalorder %s55_s22, %s1292_s23  ;;  %p1298_p12 = scmp.lt.s32.totalorder %s1292_s23, %s1292_s23 }
  0x1b   :  { %p1299_p13 = por %p1298_p12, %p1297_p11 }
  0x1d   :  { %p1300_p0 = pnand %p1299_p13, %p1293_p10 }
  0x1f   :  { %1303 = shalt.err (!%p1300_p0)
}
  0x20   :  { %60 = dma.hbm_to_vmem [thread:$0]  %s1563_s6, 2048, %s55_s22, [#allocation5], %s1310_s14, %s1310_s14, %s1311_s15  }
  0x21   :  { %1304 = dma.done.wait [#allocation3], 6144  }
  0x22   :  { %1305 = vsyncadd [#allocation3], 4294961152 }
  0x23   :  { %1306 = dma.done.wait [#allocation5], 8192  }
  0x24   :  { %1307 = vsyncadd [#allocation5], 4294959104  ;;  %v1313_v0 = vmov 0.0   ;;  %vm1314_vm0 = vmmov 0   ;;  %v88_v1 = vld [vmem:[#allocation2 + $0x78] sm:$0xff]  ;;  %v87_v2 = vld [vmem:[#allocation2 + $0x70] sm:$0xff] }
  0x25   :  { %986 = vmatprep.subr.mxu0 %v1313_v0  ;;  %1018 = vmatprep.mubr.msk.f32.mxu0 %vm1314_vm0, %v1313_v0  ;;  %v86_v3 = vld [vmem:[#allocation2 + $0x68] sm:$0xff]  ;;  %v85_v4 = vld [vmem:[#allocation2 + $0x60] sm:$0xff]  ;;  %v84_v5 = vld [vmem:[#allocation2 + $0x58] sm:$0xff] }
  0x26   :  { %1021 = vmatprep.subr.mxu1 %v1313_v0  ;;  %1053 = vmatprep.mubr.msk.f32.mxu1 %vm1314_vm0, %v1313_v0  ;;  %v83_v6 = vld [vmem:[#allocation2 + $0x50] sm:$0xff]  ;;  %v82_v7 = vld [vmem:[#allocation2 + $0x48] sm:$0xff]  ;;  %v81_v8 = vld [vmem:[#allocation2 + $0x40] sm:$0xff] }
  0x27   :  { %987 = vmatpush3.msra.mxu0 %v88_v1  ;;  %v80_v9 = vld [vmem:[#allocation2 + $0x38] sm:$0xff]  ;;  %v79_v10 = vld [vmem:[#allocation2 + $0x30] sm:$0xff]  ;;  %v78_v11 = vld [vmem:[#allocation2 + $0x28] sm:$0xff] }
  0x28   :  { %988 = vmatprep.subr.mxu0 %v1313_v0  ;;  %v77_v12 = vld [vmem:[#allocation2 + $0x20] sm:$0xff]  ;;  %v76_v13 = vld [vmem:[#allocation2 + $0x18] sm:$0xff]  ;;  %v75_v14 = vld [vmem:[#allocation2 + $0x10] sm:$0xff] }
  0x29   :  { %989 = vmatpush3.msra.mxu0 %v87_v2  ;;  %v74_v15 = vld [vmem:[#allocation2 + $0x8] sm:$0xff]  ;;  %v73_v16 = vld [vmem:[#allocation2] sm:$0xff]  ;;  %v213_v18 = vld [vmem:[#allocation4 + $0x78] sm:$0xff] }
  0x2a   :  { %990 = vmatprep.subr.mxu0 %v1313_v0  ;;  %v1397_v17 = vld [vmem:[%s1557_s0] sm:$0xff]  ;;  %1022 = vmatpush3.msra.mxu1 %v213_v18  ;;  %v212_v19 = vld [vmem:[#allocation4 + $0x70] sm:$0xff]  ;;  %v211_v20 = vld [vmem:[#allocation4 + $0x68] sm:$0xff] }
  0x2b   :  { %991 = vmatpush3.msra.mxu0 %v86_v3  ;;  %1023 = vmatprep.subr.mxu1 %v1313_v0  ;;  %v210_v21 = vld [vmem:[#allocation4 + $0x60] sm:$0xff]  ;;  %v209_v22 = vld [vmem:[#allocation4 + $0x58] sm:$0xff]  ;;  %v208_v23 = vld [vmem:[#allocation4 + $0x50] sm:$0xff] }
  0x2c   :  { %992 = vmatprep.subr.mxu0 %v1313_v0  ;;  %1024 = vmatpush3.msra.mxu1 %v212_v19  ;;  %v207_v24 = vld [vmem:[#allocation4 + $0x48] sm:$0xff]  ;;  %v206_v25 = vld [vmem:[#allocation4 + $0x40] sm:$0xff]  ;;  %v205_v26 = vld [vmem:[#allocation4 + $0x38] sm:$0xff] }
  0x2d   :  { %993 = vmatpush3.msra.mxu0 %v85_v4  ;;  %1025 = vmatprep.subr.mxu1 %v1313_v0  ;;  %v204_v27 = vld [vmem:[#allocation4 + $0x30] sm:$0xff]  ;;  %v203_v28 = vld [vmem:[#allocation4 + $0x28] sm:$0xff]  ;;  %v202_v29 = vld [vmem:[#allocation4 + $0x20] sm:$0xff] }
  0x2e   :  { %994 = vmatprep.subr.mxu0 %v1313_v0  ;;  %1026 = vmatpush3.msra.mxu1 %v211_v20  ;;  %v201_v30 = vld [vmem:[#allocation4 + $0x18] sm:$0xff]  ;;  %v200_v31 = vld [vmem:[#allocation4 + $0x10] sm:$0xff]  ;;  %v199_v32 = vld [vmem:[#allocation4 + $0x8] sm:$0xff] }
  0x2f   :  { %995 = vmatpush3.msra.mxu0 %v84_v5  ;;  %1027 = vmatprep.subr.mxu1 %v1313_v0  ;;  %v198_v33 = vld [vmem:[#allocation4] sm:$0xff]  ;;  %v309_v34 = vld [vmem:[#allocation2 + $0xf8] sm:$0xff]  ;;  %v308_v35 = vld [vmem:[#allocation2 + $0xf0] sm:$0xff] }
  0x30   :  { %996 = vmatprep.subr.mxu0 %v1313_v0  ;;  %1028 = vmatpush3.msra.mxu1 %v210_v21  ;;  %v307_v36 = vld [vmem:[#allocation2 + $0xe8] sm:$0xff]  ;;  %v306_v37 = vld [vmem:[#allocation2 + $0xe0] sm:$0xff]  ;;  %v305_v38 = vld [vmem:[#allocation2 + $0xd8] sm:$0xff] }
  0x31   :  { %997 = vmatpush3.msra.mxu0 %v83_v6  ;;  %1029 = vmatprep.subr.mxu1 %v1313_v0  ;;  %v304_v39 = vld [vmem:[#allocation2 + $0xd0] sm:$0xff]  ;;  %v303_v40 = vld [vmem:[#allocation2 + $0xc8] sm:$0xff]  ;;  %v302_v41 = vld [vmem:[#allocation2 + $0xc0] sm:$0xff] }
  0x32   :  { %998 = vmatprep.subr.mxu0 %v1313_v0  ;;  %1030 = vmatpush3.msra.mxu1 %v209_v22  ;;  %v301_v42 = vld [vmem:[#allocation2 + $0xb8] sm:$0xff]  ;;  %v300_v43 = vld [vmem:[#allocation2 + $0xb0] sm:$0xff]  ;;  %v299_v44 = vld [vmem:[#allocation2 + $0xa8] sm:$0xff] }
  0x33   :  { %999 = vmatpush3.msra.mxu0 %v82_v7  ;;  %1031 = vmatprep.subr.mxu1 %v1313_v0  ;;  %v298_v45 = vld [vmem:[#allocation2 + $0xa0] sm:$0xff]  ;;  %v297_v46 = vld [vmem:[#allocation2 + $0x98] sm:$0xff] }
  0x34   :  { %1000 = vmatprep.subr.mxu0 %v1313_v0  ;;  %1032 = vmatpush3.msra.mxu1 %v208_v23  ;;  %v849_v7 = vld [vmem:[%s1559_s2] ss:$0 sm:$0xff]  ;;  %v437_v22 = vld [vmem:[#allocation4 + $0xf8] sm:$0xff]  ;;  %v436_v23 = vld [vmem:[#allocation4 + $0xf0] sm:$0xff] }
  0x35   :  { %1001 = vmatpush3.msra.mxu0 %v81_v8  ;;  %1033 = vmatprep.subr.mxu1 %v1313_v0 }
  0x36   :  { %1002 = vmatprep.subr.mxu0 %v1313_v0  ;;  %1034 = vmatpush3.msra.mxu1 %v207_v24  ;;  %v435_v24 = vld [vmem:[#allocation4 + $0xe8] sm:$0xff] }
  0x37   :  { %1003 = vmatpush3.msra.mxu0 %v80_v9  ;;  %1035 = vmatprep.subr.mxu1 %v1313_v0  ;;  %v850_v9 = vld [vmem:[%s1560_s3] ss:$0 sm:$0xff] }
  0x38   :  { %1004 = vmatprep.subr.mxu0 %v1313_v0  ;;  %1036 = vmatpush3.msra.mxu1 %v206_v25  ;;  %v434_v25 = vld [vmem:[#allocation4 + $0xe0] sm:$0xff] }
  0x39   :  { %1005 = vmatpush3.msra.mxu0 %v79_v10  ;;  %1037 = vmatprep.subr.mxu1 %v1313_v0 }
  0x3a   :  { %1006 = vmatprep.subr.mxu0 %v1313_v0  ;;  %1038 = vmatpush3.msra.mxu1 %v205_v26  ;;  %v432_v26 = vld [vmem:[#allocation4 + $0xd0] sm:$0xff] }
  0x3b   :  { %1007 = vmatpush3.msra.mxu0 %v78_v11  ;;  %1039 = vmatprep.subr.mxu1 %v1313_v0 }
  0x3c   :  { %1008 = vmatprep.subr.mxu0 %v1313_v0  ;;  %1040 = vmatpush3.msra.mxu1 %v204_v27  ;;  %v431_v27 = vld [vmem:[#allocation4 + $0xc8] sm:$0xff] }
  0x3d   :  { %1009 = vmatpush3.msra.mxu0 %v77_v12  ;;  %1041 = vmatprep.subr.mxu1 %v1313_v0 }
  0x3e   :  { %1010 = vmatprep.subr.mxu0 %v1313_v0  ;;  %1042 = vmatpush3.msra.mxu1 %v203_v28  ;;  %v430_v28 = vld [vmem:[#allocation4 + $0xc0] sm:$0xff] }
  0x3f   :  { %1011 = vmatpush3.msra.mxu0 %v76_v13  ;;  %1043 = vmatprep.subr.mxu1 %v1313_v0  ;;  %v296_v13 = vld [vmem:[#allocation2 + $0x90] sm:$0xff] }
  0x40   :  { %1012 = vmatprep.subr.mxu0 %v1313_v0  ;;  %1044 = vmatpush3.msra.mxu1 %v202_v29  ;;  %v429_v29 = vld [vmem:[#allocation4 + $0xb8] sm:$0xff] }
  0x41   :  { %1013 = vmatpush3.msra.mxu0 %v75_v14  ;;  %1045 = vmatprep.subr.mxu1 %v1313_v0  ;;  %v295_v14 = vld [vmem:[#allocation2 + $0x88] sm:$0xff] }
  0x42   :  { %1014 = vmatprep.subr.mxu0 %v1313_v0  ;;  %1046 = vmatpush3.msra.mxu1 %v201_v30  ;;  %v428_v30 = vld [vmem:[#allocation4 + $0xb0] sm:$0xff] }
  0x43   :  { %1015 = vmatpush3.msra.mxu0 %v74_v15  ;;  %1047 = vmatprep.subr.mxu1 %v1313_v0  ;;  %v294_v15 = vld [vmem:[#allocation2 + $0x80] sm:$0xff] }
  0x44   :  { %1016 = vmatprep.subr.mxu0 %v1313_v0  ;;  %1048 = vmatpush3.msra.mxu1 %v200_v31  ;;  %v427_v31 = vld [vmem:[#allocation4 + $0xa8] sm:$0xff] }
  0x45   :  { %1017 = vmatpush3.msra.mxu0 %v73_v16  ;;  %1049 = vmatprep.subr.mxu1 %v1313_v0  ;;  %v851_v16 = vld [vmem:[%s1562_s5] ss:$0 sm:$0xff] }
  0x46   :  { %1019 = vmatmul.mubr.f32.vlgmr.msra.gmra.mxu0 %v1397_v17  ;;  %1056 = vmatprep.subr.mxu0 %v1313_v0 }
  0x47   :  { %1088 = vmatprep.mubr.msk.f32.mxu0 %vm1314_vm0, %v1313_v0  ;;  %1050 = vmatpush3.msra.mxu1 %v199_v32  ;;  %v426_v32 = vld [vmem:[#allocation4 + $0xa0] sm:$0xff] }
  0x48   :  { %1051 = vmatprep.subr.mxu1 %v1313_v0  ;;  %1057 = vmatpush3.msra.mxu0 %v309_v34  ;;  %v424_v34 = vld [vmem:[#allocation4 + $0x90] sm:$0xff] }
  0x49   :  { %1052 = vmatpush3.msra.mxu1 %v198_v33  ;;  %1058 = vmatprep.subr.mxu0 %v1313_v0  ;;  %v425_v33 = vld [vmem:[#allocation4 + $0x98] sm:$0xff] }
  0x4a   :  { %1091 = vmatprep.subr.mxu1 %v1313_v0  ;;  %1059 = vmatpush3.msra.mxu0 %v308_v35  ;;  %v423_v35 = vld [vmem:[#allocation4 + $0x88] sm:$0xff] }
  0x4b   :  { %1060 = vmatprep.subr.mxu0 %v1313_v0 }
  0x4c   :  { %1061 = vmatpush3.msra.mxu0 %v307_v36  ;;  %v422_v36 = vld [vmem:[#allocation4 + $0x80] sm:$0xff] }
  0x4d   :  { %1062 = vmatprep.subr.mxu0 %v1313_v0 }
  0x4e   :  { %1063 = vmatpush3.msra.mxu0 %v306_v37  ;;  %v535_v37 = vld [vmem:[#allocation2 + $0x178] sm:$0xff] }
  0x4f   :  { %1064 = vmatprep.subr.mxu0 %v1313_v0 }
  0x50   :  { %1065 = vmatpush3.msra.mxu0 %v305_v38  ;;  %v534_v38 = vld [vmem:[#allocation2 + $0x170] sm:$0xff] }
  0x51   :  { %1066 = vmatprep.subr.mxu0 %v1313_v0 }
  0x52   :  { %1067 = vmatpush3.msra.mxu0 %v304_v39  ;;  %v533_v39 = vld [vmem:[#allocation2 + $0x168] sm:$0xff] }
  0x53   :  { %1068 = vmatprep.subr.mxu0 %v1313_v0 }
  0x54   :  { %1069 = vmatpush3.msra.mxu0 %v303_v40  ;;  %v532_v40 = vld [vmem:[#allocation2 + $0x160] sm:$0xff] }
  0x55   :  { %1070 = vmatprep.subr.mxu0 %v1313_v0 }
  0x56   :  { %1071 = vmatpush3.msra.mxu0 %v302_v41  ;;  %v531_v41 = vld [vmem:[#allocation2 + $0x158] sm:$0xff] }
  0x57   :  { %1072 = vmatprep.subr.mxu0 %v1313_v0 }
  0x58   :  { %1073 = vmatpush3.msra.mxu0 %v301_v42  ;;  %v530_v42 = vld [vmem:[#allocation2 + $0x150] sm:$0xff] }
  0x59   :  { %1074 = vmatprep.subr.mxu0 %v1313_v0 }
  0x5a   :  { %1075 = vmatpush3.msra.mxu0 %v300_v43  ;;  %v529_v43 = vld [vmem:[#allocation2 + $0x148] sm:$0xff] }
  0x5b   :  { %1076 = vmatprep.subr.mxu0 %v1313_v0 }
  0x5c   :  { %1077 = vmatpush3.msra.mxu0 %v299_v44  ;;  %v528_v44 = vld [vmem:[#allocation2 + $0x140] sm:$0xff] }
  0x5d   :  { %1078 = vmatprep.subr.mxu0 %v1313_v0 }
  0x5e   :  { %1079 = vmatpush3.msra.mxu0 %v298_v45  ;;  %v527_v45 = vld [vmem:[#allocation2 + $0x138] sm:$0xff] }
  0x5f   :  { %1080 = vmatprep.subr.mxu0 %v1313_v0 }
  0x60   :  { %1081 = vmatpush3.msra.mxu0 %v297_v46  ;;  %v526_v46 = vld [vmem:[#allocation2 + $0x130] sm:$0xff] }
  0x61   :  { %1082 = vmatprep.subr.mxu0 %v1313_v0 }
  0x62   :  { %1083 = vmatpush3.msra.mxu0 %v296_v13 }
  0x63   :  { %1084 = vmatprep.subr.mxu0 %v1313_v0 }
  0x64   :  { %1085 = vmatpush3.msra.mxu0 %v295_v14 }
  0x65   :  { %1086 = vmatprep.subr.mxu0 %v1313_v0 }
  0x66   :  { %1087 = vmatpush3.msra.mxu0 %v294_v15 }
  0x67   :  { %1126 = vmatprep.subr.mxu0 %v1313_v0 }
 0x106   :  { %v155_v47 = vpop.f32.mrf.mxu0 }
 0x107   :  { %v159_v48 = vrot.slane %v155_v47, 4  ;;  %v165_v49 = vmul.f32 %v155_v47, %v155_v47 }
 0x108   :  { %v1020_v50 = vpop.f32.mrf.mxu0 }
 0x109   :  { %v160_v51 = vadd.f32 %v159_v48, %v155_v47  ;;  %v166_v52 = vrot.slane %v165_v49, 4  ;;  %v524_v48 = vld [vmem:[#allocation2 + $0x120] sm:$0xff] }
 0x10b   :  { %v161_v53 = vrot.slane %v160_v51, 2  ;;  %v167_v54 = vadd.f32 %v166_v52, %v165_v49  ;;  %v523_v49 = vld [vmem:[#allocation2 + $0x118] sm:$0xff] }
 0x10d   :  { %v162_v55 = vadd.f32 %v161_v53, %v160_v51  ;;  %v168_v56 = vrot.slane %v167_v54, 2 }
 0x10f   :  { %v163_v57 = vrot.slane %v162_v55, 1  ;;  %v169_v58 = vadd.f32 %v168_v56, %v167_v54 }
 0x111   :  { %v164_v59 = vadd.f32 %v163_v57, %v162_v55  ;;  %v170_v60 = vrot.slane %v169_v58, 1 }
 0x113   :  { %v171_v61 = vadd.f32 %v170_v60, %v169_v58  ;;  %v172_v62 = vmul.f32 0.125, %v164_v59 }
 0x115   :  { %v173_v63 = vmul.f32 0.125, %v171_v61  ;;  %v174_v1 = vmul.f32 %v172_v62, %v172_v62  ;;  %v177_v5 = vsub.f32 %v155_v47, %v172_v62  ;;  %v525_v47 = vld [vmem:[#allocation2 + $0x128] sm:$0xff] }
 0x117   :  { %v175_v2 = vsub.f32 %v173_v63, %v174_v1 }
 0x119   :  { %v176_v3 = vmax.f32 %v175_v2, 0.0 }
 0x11b   :  { %v178_v4 = vadd.f32 1e-05, %v176_v3 }
 0x11d   :  { %1238 = vrsqrt.f32 %v178_v4 }
 0x12a   :  { %v1239_v6 = vpop.eup %1238 }
 0x12b   :  { %v180_v8 = vmul.f32 %v1239_v6, %v177_v5 }
 0x12d   :  { %v188_v10 = vmul.f32 %v849_v7, %v180_v8 }
 0x12f   :  { %v196_v11 = vadd.f32 %v850_v9, %v188_v10  ;;  %v853_v10 = vld [vmem:[%s1559_s2 + $0x1] ss:$0 sm:$0xff] }
 0x131   :  { %v197_v12 = vmax.f32 %v196_v11, 0.0 }
 0x133   :  { %1054 = vmatmul.mubr.f32.vlgmr.msra.gmra.mxu1 %v197_v12  ;;  %v855_v12 = vld [vmem:[%s1560_s3 + $0x1] ss:$0 sm:$0xff] }
 0x134   :  { %1123 = vmatprep.mubr.msk.f32.mxu1 %vm1314_vm0, %v1313_v0  ;;  %1092 = vmatpush3.msra.mxu1 %v437_v22 }
 0x135   :  { %1093 = vmatprep.subr.mxu1 %v1313_v0 }
 0x136   :  { %1094 = vmatpush3.msra.mxu1 %v436_v23 }
 0x137   :  { %1095 = vmatprep.subr.mxu1 %v1313_v0 }
 0x138   :  { %1096 = vmatpush3.msra.mxu1 %v435_v24 }
 0x139   :  { %1097 = vmatprep.subr.mxu1 %v1313_v0 }
 0x13a   :  { %1098 = vmatpush3.msra.mxu1 %v434_v25 }
 0x13b   :  { %1099 = vmatprep.subr.mxu1 %v1313_v0 }
 0x1f3   :  { %v287_v18 = vpop.f32.mrf.mxu1 }
 0x1f4   :  { %v288_v19 = vadd.f32 %v851_v16, %v287_v18  ;;  %v522_v16 = vld [vmem:[#allocation2 + $0x110] sm:$0xff]  ;;  %v521_v18 = vld [vmem:[#allocation2 + $0x108] sm:$0xff] }
 0x1f5   :  { %v1055_v20 = vpop.f32.mrf.mxu1 }
 0x1f6   :  { %291 = vst [vmem:[%s1566_s9] sm:$0xff] %v288_v19  ;;  %v1451_v21 = vadd.f32 %v288_v19, %v1397_v17  ;;  %v433_v17 = vld [vmem:[#allocation4 + $0xd8] sm:$0xff]  ;;  %v520_v19 = vld [vmem:[#allocation2 + $0x100] sm:$0xff] }
 0x1f7   :  { %1100 = vmatpush3.msra.mxu1 %v433_v17  ;;  %v857_v20 = vld [vmem:[%s1562_s5 + $0x1] ss:$0 sm:$0xff]  ;;  %v663_v17 = vld [vmem:[#allocation4 + $0x178] sm:$0xff] }
 0x1f8   :  { %1089 = vmatmul.mubr.f32.vlgmr.msra.gmra.mxu0 %v1451_v21  ;;  %1101 = vmatprep.subr.mxu1 %v1313_v0 }
 0x1f9   :  { %1158 = vmatprep.mubr.msk.f32.mxu0 %vm1314_vm0, %v1313_v0  ;;  %1102 = vmatpush3.msra.mxu1 %v432_v26  ;;  %v662_v26 = vld [vmem:[#allocation4 + $0x170] sm:$0xff] }
 0x1fa   :  { %1103 = vmatprep.subr.mxu1 %v1313_v0  ;;  %1127 = vmatpush3.msra.mxu0 %v535_v37  ;;  %v650_v37 = vld [vmem:[#allocation4 + $0x110] sm:$0xff] }
 0x1fb   :  { %1104 = vmatpush3.msra.mxu1 %v431_v27  ;;  %1128 = vmatprep.subr.mxu0 %v1313_v0  ;;  %v661_v27 = vld [vmem:[#allocation4 + $0x168] sm:$0xff] }
 0x1fc   :  { %1105 = vmatprep.subr.mxu1 %v1313_v0  ;;  %1129 = vmatpush3.msra.mxu0 %v534_v38  ;;  %v649_v38 = vld [vmem:[#allocation4 + $0x108] sm:$0xff] }
 0x1fd   :  { %1106 = vmatpush3.msra.mxu1 %v430_v28  ;;  %1130 = vmatprep.subr.mxu0 %v1313_v0  ;;  %v660_v28 = vld [vmem:[#allocation4 + $0x160] sm:$0xff] }
 0x1fe   :  { %1107 = vmatprep.subr.mxu1 %v1313_v0  ;;  %1131 = vmatpush3.msra.mxu0 %v533_v39  ;;  %v648_v39 = vld [vmem:[#allocation4 + $0x100] sm:$0xff] }
 0x1ff   :  { %1108 = vmatpush3.msra.mxu1 %v429_v29  ;;  %1132 = vmatprep.subr.mxu0 %v1313_v0  ;;  %v658_v29 = vld [vmem:[#allocation4 + $0x150] sm:$0xff] }
 0x200   :  { %1109 = vmatprep.subr.mxu1 %v1313_v0  ;;  %1133 = vmatpush3.msra.mxu0 %v532_v40  ;;  %v760_v40 = vld [vmem:[#allocation6 + $0x78] sm:$0xff] }
 0x201   :  { %1110 = vmatpush3.msra.mxu1 %v428_v30  ;;  %1134 = vmatprep.subr.mxu0 %v1313_v0  ;;  %v657_v30 = vld [vmem:[#allocation4 + $0x148] sm:$0xff] }
 0x202   :  { %1111 = vmatprep.subr.mxu1 %v1313_v0  ;;  %1135 = vmatpush3.msra.mxu0 %v531_v41  ;;  %v759_v41 = vld [vmem:[#allocation6 + $0x70] sm:$0xff] }
 0x203   :  { %1112 = vmatpush3.msra.mxu1 %v427_v31  ;;  %1136 = vmatprep.subr.mxu0 %v1313_v0  ;;  %v656_v31 = vld [vmem:[#allocation4 + $0x140] sm:$0xff] }
 0x204   :  { %1113 = vmatprep.subr.mxu1 %v1313_v0  ;;  %1137 = vmatpush3.msra.mxu0 %v530_v42  ;;  %v758_v42 = vld [vmem:[#allocation6 + $0x68] sm:$0xff] }
 0x205   :  { %1114 = vmatpush3.msra.mxu1 %v426_v32  ;;  %1138 = vmatprep.subr.mxu0 %v1313_v0  ;;  %v655_v32 = vld [vmem:[#allocation4 + $0x138] sm:$0xff] }
 0x206   :  { %1115 = vmatprep.subr.mxu1 %v1313_v0  ;;  %1139 = vmatpush3.msra.mxu0 %v529_v43  ;;  %v757_v43 = vld [vmem:[#allocation6 + $0x60] sm:$0xff] }
 0x207   :  { %1116 = vmatpush3.msra.mxu1 %v425_v33  ;;  %1140 = vmatprep.subr.mxu0 %v1313_v0  ;;  %v654_v33 = vld [vmem:[#allocation4 + $0x130] sm:$0xff] }
 0x208   :  { %1117 = vmatprep.subr.mxu1 %v1313_v0  ;;  %1141 = vmatpush3.msra.mxu0 %v528_v44  ;;  %v756_v44 = vld [vmem:[#allocation6 + $0x58] sm:$0xff] }
 0x209   :  { %1118 = vmatpush3.msra.mxu1 %v424_v34  ;;  %1142 = vmatprep.subr.mxu0 %v1313_v0  ;;  %v653_v34 = vld [vmem:[#allocation4 + $0x128] sm:$0xff] }
 0x20a   :  { %1119 = vmatprep.subr.mxu1 %v1313_v0  ;;  %1143 = vmatpush3.msra.mxu0 %v527_v45  ;;  %v755_v45 = vld [vmem:[#allocation6 + $0x50] sm:$0xff] }
 0x20b   :  { %1120 = vmatpush3.msra.mxu1 %v423_v35  ;;  %1144 = vmatprep.subr.mxu0 %v1313_v0  ;;  %v652_v35 = vld [vmem:[#allocation4 + $0x120] sm:$0xff] }
 0x20c   :  { %1121 = vmatprep.subr.mxu1 %v1313_v0  ;;  %1145 = vmatpush3.msra.mxu0 %v526_v46  ;;  %v754_v46 = vld [vmem:[#allocation6 + $0x48] sm:$0xff] }
 0x20d   :  { %1122 = vmatpush3.msra.mxu1 %v422_v36  ;;  %1146 = vmatprep.subr.mxu0 %v1313_v0  ;;  %v651_v36 = vld [vmem:[#allocation4 + $0x118] sm:$0xff] }
 0x20e   :  { %1161 = vmatprep.subr.mxu1 %v1313_v0  ;;  %1147 = vmatpush3.msra.mxu0 %v525_v47  ;;  %v753_v47 = vld [vmem:[#allocation6 + $0x40] sm:$0xff] }
 0x20f   :  { %1148 = vmatprep.subr.mxu0 %v1313_v0 }
 0x210   :  { %1149 = vmatpush3.msra.mxu0 %v524_v48  ;;  %v752_v48 = vld [vmem:[#allocation6 + $0x38] sm:$0xff] }
 0x211   :  { %1150 = vmatprep.subr.mxu0 %v1313_v0 }
 0x212   :  { %1151 = vmatpush3.msra.mxu0 %v523_v49  ;;  %v751_v49 = vld [vmem:[#allocation6 + $0x30] sm:$0xff] }
 0x213   :  { %1152 = vmatprep.subr.mxu0 %v1313_v0 }
 0x214   :  { %1153 = vmatpush3.msra.mxu0 %v522_v16 }
 0x215   :  { %1154 = vmatprep.subr.mxu0 %v1313_v0 }
 0x216   :  { %1155 = vmatpush3.msra.mxu0 %v521_v18 }
 0x217   :  { %1156 = vmatprep.subr.mxu0 %v1313_v0 }
 0x218   :  { %1157 = vmatpush3.msra.mxu0 %v520_v19 }
 0x219   :  { %1196 = vmatprep.subr.mxu0 %v1313_v0 }
 0x2b8   :  { %v376_v50 = vpop.f32.mrf.mxu0 }
 0x2b9   :  { %v380_v51 = vrot.slane %v376_v50, 4  ;;  %v386_v52 = vmul.f32 %v376_v50, %v376_v50 }
 0x2ba   :  { %v1090_v53 = vpop.f32.mrf.mxu0 }
 0x2bb   :  { %v381_v54 = vadd.f32 %v380_v51, %v376_v50  ;;  %v387_v55 = vrot.slane %v386_v52, 4  ;;  %v749_v51 = vld [vmem:[#allocation6 + $0x20] sm:$0xff] }
 0x2bd   :  { %v382_v56 = vrot.slane %v381_v54, 2  ;;  %v388_v57 = vadd.f32 %v387_v55, %v386_v52  ;;  %v748_v52 = vld [vmem:[#allocation6 + $0x18] sm:$0xff] }
 0x2bf   :  { %v383_v58 = vadd.f32 %v382_v56, %v381_v54  ;;  %v389_v59 = vrot.slane %v388_v57, 2 }
 0x2c1   :  { %v384_v60 = vrot.slane %v383_v58, 1  ;;  %v390_v61 = vadd.f32 %v389_v59, %v388_v57 }
 0x2c3   :  { %v385_v62 = vadd.f32 %v384_v60, %v383_v58  ;;  %v391_v63 = vrot.slane %v390_v61, 1 }
 0x2c5   :  { %v392_v1 = vadd.f32 %v391_v63, %v390_v61  ;;  %v393_v2 = vmul.f32 0.125, %v385_v62 }
 0x2c7   :  { %v394_v3 = vmul.f32 0.125, %v392_v1  ;;  %v395_v4 = vmul.f32 %v393_v2, %v393_v2  ;;  %v398_v8 = vsub.f32 %v376_v50, %v393_v2  ;;  %v750_v50 = vld [vmem:[#allocation6 + $0x28] sm:$0xff] }
 0x2c9   :  { %v396_v5 = vsub.f32 %v394_v3, %v395_v4 }
 0x2cb   :  { %v397_v6 = vmax.f32 %v396_v5, 0.0 }
 0x2cd   :  { %v399_v7 = vadd.f32 1e-05, %v397_v6 }
 0x2cf   :  { %1240 = vrsqrt.f32 %v399_v7 }
 0x2dc   :  { %v1241_v9 = vpop.eup %1240 }
 0x2dd   :  { %v401_v11 = vmul.f32 %v1241_v9, %v398_v8 }
 0x2df   :  { %v410_v13 = vmul.f32 %v853_v10, %v401_v11 }
 0x2e1   :  { %v419_v14 = vadd.f32 %v855_v12, %v410_v13  ;;  %v860_v13 = vld [vmem:[%s1559_s2 + $0x2] ss:$0 sm:$0xff] }
 0x2e3   :  { %v420_v15 = vmax.f32 %v419_v14, 0.0 }
 0x2e5   :  { %1124 = vmatmul.mubr.f32.vlgmr.msra.gmra.mxu1 %v420_v15  ;;  %v862_v15 = vld [vmem:[%s1560_s3 + $0x2] ss:$0 sm:$0xff] }
 0x2e6   :  { %1193 = vmatprep.mubr.msk.f32.mxu1 %vm1314_vm0, %v1313_v0  ;;  %1162 = vmatpush3.msra.mxu1 %v663_v17 }
 0x2e7   :  { %1163 = vmatprep.subr.mxu1 %v1313_v0 }
 0x2e8   :  { %1164 = vmatpush3.msra.mxu1 %v662_v26 }
 0x2e9   :  { %1165 = vmatprep.subr.mxu1 %v1313_v0 }
 0x2ea   :  { %1166 = vmatpush3.msra.mxu1 %v661_v27 }
 0x2eb   :  { %1167 = vmatprep.subr.mxu1 %v1313_v0 }
 0x2ec   :  { %1168 = vmatpush3.msra.mxu1 %v660_v28 }
 0x2ed   :  { %1169 = vmatprep.subr.mxu1 %v1313_v0 }
 0x3a5   :  { %v512_v22 = vpop.f32.mrf.mxu1 }
 0x3a6   :  { %v513_v23 = vadd.f32 %v857_v20, %v512_v22  ;;  %v747_v20 = vld [vmem:[#allocation6 + $0x10] sm:$0xff]  ;;  %v746_v22 = vld [vmem:[#allocation6 + $0x8] sm:$0xff] }
 0x3a7   :  { %v1125_v24 = vpop.f32.mrf.mxu1 }
 0x3a8   :  { %858 = vst [vmem:[%s1566_s9 + $0x8] sm:$0xff] %v513_v23  ;;  %v1503_v25 = vadd.f32 %v513_v23, %v1451_v21  ;;  %v659_v21 = vld [vmem:[#allocation4 + $0x158] sm:$0xff]  ;;  %v745_v23 = vld [vmem:[#allocation6] sm:$0xff] }
 0x3a9   :  { %1170 = vmatpush3.msra.mxu1 %v659_v21  ;;  %v864_v24 = vld [vmem:[%s1562_s5 + $0x2] ss:$0 sm:$0xff] }
 0x3aa   :  { %1159 = vmatmul.mubr.f32.vlgmr.msra.gmra.mxu0 %v1503_v25  ;;  %1171 = vmatprep.subr.mxu1 %v1313_v0 }
 0x3ab   :  { %1228 = vmatprep.mubr.msk.f32.mxu0 %vm1314_vm0, %v1313_v0  ;;  %1172 = vmatpush3.msra.mxu1 %v658_v29 }
 0x3ac   :  { %1173 = vmatprep.subr.mxu1 %v1313_v0  ;;  %1197 = vmatpush3.msra.mxu0 %v760_v40 }
 0x3ad   :  { %1174 = vmatpush3.msra.mxu1 %v657_v30  ;;  %1198 = vmatprep.subr.mxu0 %v1313_v0 }
 0x3ae   :  { %1175 = vmatprep.subr.mxu1 %v1313_v0  ;;  %1199 = vmatpush3.msra.mxu0 %v759_v41 }
 0x3af   :  { %1176 = vmatpush3.msra.mxu1 %v656_v31  ;;  %1200 = vmatprep.subr.mxu0 %v1313_v0 }
 0x3b0   :  { %1177 = vmatprep.subr.mxu1 %v1313_v0  ;;  %1201 = vmatpush3.msra.mxu0 %v758_v42 }
 0x3b1   :  { %1178 = vmatpush3.msra.mxu1 %v655_v32  ;;  %1202 = vmatprep.subr.mxu0 %v1313_v0 }
 0x3b2   :  { %1179 = vmatprep.subr.mxu1 %v1313_v0  ;;  %1203 = vmatpush3.msra.mxu0 %v757_v43 }
 0x3b3   :  { %1180 = vmatpush3.msra.mxu1 %v654_v33  ;;  %1204 = vmatprep.subr.mxu0 %v1313_v0 }
 0x3b4   :  { %1181 = vmatprep.subr.mxu1 %v1313_v0  ;;  %1205 = vmatpush3.msra.mxu0 %v756_v44 }
 0x3b5   :  { %1182 = vmatpush3.msra.mxu1 %v653_v34  ;;  %1206 = vmatprep.subr.mxu0 %v1313_v0 }
 0x3b6   :  { %1183 = vmatprep.subr.mxu1 %v1313_v0  ;;  %1207 = vmatpush3.msra.mxu0 %v755_v45 }
 0x3b7   :  { %1184 = vmatpush3.msra.mxu1 %v652_v35  ;;  %1208 = vmatprep.subr.mxu0 %v1313_v0 }
 0x3b8   :  { %1185 = vmatprep.subr.mxu1 %v1313_v0  ;;  %1209 = vmatpush3.msra.mxu0 %v754_v46 }
 0x3b9   :  { %1186 = vmatpush3.msra.mxu1 %v651_v36  ;;  %1210 = vmatprep.subr.mxu0 %v1313_v0 }
 0x3ba   :  { %1187 = vmatprep.subr.mxu1 %v1313_v0  ;;  %1211 = vmatpush3.msra.mxu0 %v753_v47 }
 0x3bb   :  { %1188 = vmatpush3.msra.mxu1 %v650_v37  ;;  %1212 = vmatprep.subr.mxu0 %v1313_v0 }
 0x3bc   :  { %1189 = vmatprep.subr.mxu1 %v1313_v0  ;;  %1213 = vmatpush3.msra.mxu0 %v752_v48 }
 0x3bd   :  { %1190 = vmatpush3.msra.mxu1 %v649_v38  ;;  %1214 = vmatprep.subr.mxu0 %v1313_v0 }
 0x3be   :  { %1191 = vmatprep.subr.mxu1 %v1313_v0  ;;  %1215 = vmatpush3.msra.mxu0 %v751_v49 }
 0x3bf   :  { %1192 = vmatpush3.msra.mxu1 %v648_v39  ;;  %1216 = vmatprep.subr.mxu0 %v1313_v0 }
 0x3c0   :  { %1217 = vmatpush3.msra.mxu0 %v750_v50 }
 0x3c1   :  { %1218 = vmatprep.subr.mxu0 %v1313_v0 }
 0x3c2   :  { %1219 = vmatpush3.msra.mxu0 %v749_v51 }
 0x3c3   :  { %1220 = vmatprep.subr.mxu0 %v1313_v0 }
 0x3c4   :  { %1221 = vmatpush3.msra.mxu0 %v748_v52 }
 0x3c5   :  { %1222 = vmatprep.subr.mxu0 %v1313_v0 }
 0x3c6   :  { %1223 = vmatpush3.msra.mxu0 %v747_v20 }
 0x3c7   :  { %1224 = vmatprep.subr.mxu0 %v1313_v0 }
 0x3c8   :  { %1225 = vmatpush3.msra.mxu0 %v746_v22 }
 0x3c9   :  { %1226 = vmatprep.subr.mxu0 %v1313_v0  ;;  %v866_v0 = vld [vmem:[%s1564_s7] ss:$0 sm:$0xff] }
 0x3ca   :  { %1227 = vmatpush3.msra.mxu0 %v745_v23 }
 0x46a   :  { %v602_v53 = vpop.f32.mrf.mxu0 }
 0x46b   :  { %v606_v54 = vrot.slane %v602_v53, 4  ;;  %v612_v55 = vmul.f32 %v602_v53, %v602_v53 }
 0x46c   :  { %v1160_v56 = vpop.f32.mrf.mxu0 }
 0x46d   :  { %v607_v57 = vadd.f32 %v606_v54, %v602_v53  ;;  %v613_v58 = vrot.slane %v612_v55, 4 }
 0x46f   :  { %v608_v59 = vrot.slane %v607_v57, 2  ;;  %v614_v60 = vadd.f32 %v613_v58, %v612_v55 }
 0x471   :  { %v609_v61 = vadd.f32 %v608_v59, %v607_v57  ;;  %v615_v62 = vrot.slane %v614_v60, 2 }
 0x473   :  { %v610_v63 = vrot.slane %v609_v61, 1  ;;  %v616_v1 = vadd.f32 %v615_v62, %v614_v60 }
 0x475   :  { %v611_v2 = vadd.f32 %v610_v63, %v609_v61  ;;  %v617_v3 = vrot.slane %v616_v1, 1 }
 0x477   :  { %v618_v4 = vadd.f32 %v617_v3, %v616_v1  ;;  %v619_v5 = vmul.f32 0.125, %v611_v2 }
 0x479   :  { %v620_v6 = vmul.f32 0.125, %v618_v4  ;;  %v621_v7 = vmul.f32 %v619_v5, %v619_v5  ;;  %v624_v11 = vsub.f32 %v602_v53, %v619_v5 }
 0x47b   :  { %v622_v8 = vsub.f32 %v620_v6, %v621_v7 }
 0x47d   :  { %v623_v9 = vmax.f32 %v622_v8, 0.0 }
 0x47f   :  { %v625_v10 = vadd.f32 1e-05, %v623_v9 }
 0x481   :  { %1242 = vrsqrt.f32 %v625_v10 }
 0x48e   :  { %v1243_v12 = vpop.eup %1242 }
 0x48f   :  { %v627_v14 = vmul.f32 %v1243_v12, %v624_v11 }
 0x491   :  { %v636_v16 = vmul.f32 %v860_v13, %v627_v14 }
 0x493   :  { %v645_v18 = vadd.f32 %v862_v15, %v636_v16 }
 0x495   :  { %v646_v19 = vmax.f32 %v645_v18, 0.0 }
 0x497   :  { %1194 = vmatmul.mubr.f32.vlgmr.msra.gmra.mxu1 %v646_v19 }
 0x557   :  { %v738_v17 = vpop.f32.mrf.mxu1 }
 0x558   :  { %v739_v26 = vadd.f32 %v864_v24, %v738_v17 }
 0x559   :  { %v1195_v27 = vpop.f32.mrf.mxu1 }
 0x55a   :  { %865 = vst [vmem:[%s1566_s9 + $0x10] sm:$0xff] %v739_v26  ;;  %v744_v28 = vadd.f32 %v739_v26, %v1503_v25 }
 0x55c   :  { %1229 = vmatmul.mubr.f32.vlgmr.msra.gmra.mxu0 %v744_v28 }
 0x61c   :  { %v834_v21 = vpop.f32.mrf.mxu0 }
 0x61d   :  { %v835_v29 = vadd.f32 %v866_v0, %v834_v21 }
 0x61e   :  { %v1230_v30 = vpop.f32.mrf.mxu0 }
 0x61f   :  { %838 = vst [vmem:[%s1565_s8] sm:$0xff] %v835_v29 }
 0x620   :  { %847 = vsyncpa [#allocation3], 1 }
 0x621   :  { %848 = vsyncpa [#allocation5], 1 }

</bundles_post_ra>
